<compile_context>
chip_gen: v7x
topology: tpu7x:2x2x1
jax: 0.10.0
libtpu: 0.0.40
codegen_flags: <defaults>
</compile_context>

<pallas_src>
import functools

import jax
import jax.numpy as jnp
from jax.experimental import pallas as pl
from jax.experimental.pallas import tpu as pltpu


def _round_up(x, m):
    return (x + m - 1) // m * m


def _pick_tile(total, candidates):
    for t in candidates:
        if total % t == 0:
            return t
    return total


# ----------------------------------------------------------------------------
# Pallas kernel: single fused matmul  out = lhs @ rhs + bias
#   grid = (row_tiles, k_tiles); f32 accumulator scratch; init at k==0,
#   bias-add + writeback at k==last.
# ----------------------------------------------------------------------------
def _fused_rgcn_kernel(lhs_ref, rhs_ref, bias_ref, out_ref, acc_ref):
    k = pl.program_id(1)

    @pl.when(k == 0)
    def _init():
        acc_ref[...] = jnp.zeros_like(acc_ref)

    acc_ref[...] += jnp.dot(
        lhs_ref[...], rhs_ref[...], preferred_element_type=jnp.float32
    )

    @pl.when(k == pl.num_programs(1) - 1)
    def _finalize():
        out_ref[...] = acc_ref[...] + bias_ref[...]


def rgcn_fused_pallas(x, adj_norm, rel_w, root_w, bias):
    """Fused RGCN layer.

    x:        [N, H] f32 node features
    adj_norm: [R, N, N] f32 row-normalized (mean) adjacency, A_r[dst, src]
    rel_w:    [R, H, H] f32 relation weights (basis-decomposed)
    root_w:   [H, H] f32
    bias:     [H] f32
    returns:  [N, H] f32
    """
    n, h = x.shape
    r = adj_norm.shape[0]

    # (A_r @ X) @ W_r == A_r @ (X @ W_r): push the relation transform into the
    # rhs so all relations collapse into one MXU pass with K = R*N + H.
    xw = jnp.einsum("nh,rhk->rnk", x, rel_w).reshape(r * n, h)      # [R*N, H]
    a_flat = jnp.transpose(adj_norm, (1, 0, 2)).reshape(n, r * n)   # [N, R*N]

    lhs = jnp.concatenate([a_flat, x], axis=1)                      # [N, K]
    rhs = jnp.concatenate([xw, root_w], axis=0)                     # [K, H]
    k_total = r * n + h

    # Lane-dense output + MXU-friendly padding.
    h_pad = _round_up(h, 128)
    n_pad = _round_up(n, 8)
    k_pad = _round_up(k_total, 128)
    tm = _pick_tile(n_pad, (256, 128, 64, 32, 16, 8))
    tk = _pick_tile(k_pad, (512, 256, 128))

    lhs = jnp.pad(lhs, ((0, n_pad - n), (0, k_pad - k_total))).astype(jnp.bfloat16)
    rhs = jnp.pad(rhs, ((0, k_pad - k_total), (0, h_pad - h))).astype(jnp.bfloat16)
    bias_p = jnp.pad(bias.reshape(1, h), ((0, 0), (0, h_pad - h))).astype(jnp.float32)

    out = pl.pallas_call(
        _fused_rgcn_kernel,
        out_shape=jax.ShapeDtypeStruct((n_pad, h_pad), jnp.float32),
        grid_spec=pltpu.PrefetchScalarGridSpec(
            num_scalar_prefetch=0,
            grid=(n_pad // tm, k_pad // tk),
            in_specs=[
                pl.BlockSpec((tm, tk), lambda i, kk: (i, kk)),       # lhs tile
                pl.BlockSpec((tk, h_pad), lambda i, kk: (kk, 0)),    # rhs tile
                pl.BlockSpec((1, h_pad), lambda i, kk: (0, 0)),      # bias
            ],
            out_specs=pl.BlockSpec((tm, h_pad), lambda i, kk: (i, 0)),
            scratch_shapes=[pltpu.VMEM((tm, h_pad), jnp.float32)],
        ),
        compiler_params=pltpu.CompilerParams(
            dimension_semantics=("parallel", "arbitrary"),
            vmem_limit_bytes=32 * 1024 * 1024,
        ),
    )(lhs, rhs, bias_p)

    return out[:n, :h]


# ----------------------------------------------------------------------------
# Glue (plain JAX): parameter setup, dense normalized adjacency, reshapes.
# ----------------------------------------------------------------------------
def init_dtrr_params(key, hidden_dim, num_relations, num_bases):
    k_basis, k_comp, k_root, k_bias = jax.random.split(key, 4)
    scale = 1.0 / jnp.sqrt(hidden_dim)
    params = {
        # RGCN basis decomposition parameters (rgcn_num_bases > 0 branch)
        "basis": jax.random.normal(
            k_basis, (num_bases, hidden_dim, hidden_dim), jnp.float32
        ) * scale,
        "comp": jax.random.normal(k_comp, (num_relations, num_bases), jnp.float32),
        "root": jax.random.normal(k_root, (hidden_dim, hidden_dim), jnp.float32) * scale,
        "bias": jnp.zeros((hidden_dim,), jnp.float32),
    }
    return params


def build_normalized_adjacency(edge_index, edge_type, num_nodes, num_relations):
    """Dense per-relation adjacency A_r[dst, src], row-normalized (mean aggregation)."""
    src = edge_index[0]
    dst = edge_index[1]
    adj = jnp.zeros((num_relations, num_nodes, num_nodes), jnp.float32)
    adj = adj.at[edge_type, dst, src].add(1.0)
    deg = jnp.sum(adj, axis=-1, keepdims=True)  # in-degree per relation
    adj = adj / jnp.maximum(deg, 1.0)
    return adj


@functools.partial(jax.jit, static_argnames=("num_relations", "hidden_dim"))
def dtrr_forward(params, input_s, input_a, edge_index, edge_type,
                 num_relations, hidden_dim):
    batch = input_s.shape[0]

    # concat along the sequence dim, flatten to node features
    graph_input = jnp.concatenate([input_s, input_a], axis=1)     # [B, 2S, H]
    node_features = jnp.reshape(graph_input, (-1, hidden_dim))    # [N, H]
    num_nodes = node_features.shape[0]

    # relation weights from basis decomposition: W_r = sum_b comp[r,b] * basis[b]
    rel_w = jnp.einsum("rb,bij->rij", params["comp"], params["basis"])

    adj_norm = build_normalized_adjacency(
        edge_index, edge_type, num_nodes, num_relations
    )

    dtrp_flat = rgcn_fused_pallas(
        node_features, adj_norm, rel_w, params["root"], params["bias"]
    )

    dtrp = jnp.reshape(dtrp_flat, (batch, -1, input_s.shape[2]))  # [B, 2S, H]
    # dropout_layer: identity in eval mode
    sent, act = jnp.split(dtrp, 2, axis=1)                        # each [B, S, H]
    return sent, act


def _rgcn_reference(x, adj_norm, rel_w, root_w, bias):
    """Pure-JAX f32 reference for the fused RGCN layer."""
    out = x @ root_w + bias
    out = out + jnp.einsum("rij,jh,rhk->ik", adj_norm, x, rel_w)
    return out


if __name__ == "__main__":
    batch, seq, hidden = 2, 8, 32
    num_relations, num_bases = 3, 2
    dropout_rate = 0.1  # eval mode -> identity

    key = jax.random.PRNGKey(0)
    ks = jax.random.split(key, 6)

    input_s = jax.random.normal(ks[0], (batch, seq, hidden), jnp.float32)
    input_a = jax.random.normal(ks[1], (batch, seq, hidden), jnp.float32)

    num_nodes = batch * 2 * seq  # 32 flattened graph nodes
    num_edges = 64
    src = jax.random.randint(ks[2], (num_edges,), 0, num_nodes)
    dst = jax.random.randint(ks[3], (num_edges,), 0, num_nodes)
    edge_index = jnp.stack([src, dst]).astype(jnp.int32)          # [2, E]
    edge_type = jax.random.randint(
        ks[4], (num_edges,), 0, num_relations
    ).astype(jnp.int32)

    params = init_dtrr_params(ks[5], hidden, num_relations, num_bases)

    sent, act = dtrr_forward(params, input_s, input_a, edge_index, edge_type,
                             num_relations, hidden)
    jax.block_until_ready((sent, act))

    assert sent.shape == (batch, seq, hidden) and act.shape == (batch, seq, hidden)

    # Loose numerical check against a pure-JAX f32 reference (kernel runs bf16
    # inputs with f32 accumulation).
    node_features = jnp.concatenate([input_s, input_a], axis=1).reshape(-1, hidden)
    rel_w = jnp.einsum("rb,bij->rij", params["comp"], params["basis"])
    adj_norm = build_normalized_adjacency(edge_index, edge_type,
                                          num_nodes, num_relations)
    ref = _rgcn_reference(node_features, adj_norm, rel_w,
                          params["root"], params["bias"])
    got = jnp.concatenate([sent, act], axis=1).reshape(-1, hidden)
    assert jnp.allclose(got, ref, rtol=5e-2, atol=5e-2), (
        float(jnp.max(jnp.abs(got - ref)))
    )

    print("KERNEL_OK")
</pallas_src>

<mosaic_0001>
module attributes {stable_mosaic.version = 11 : i64} {
  func.func private @main(%arg0: i32) attributes {dimension_semantics = [#tpu.dimension_semantics<core_parallel>], iteration_bounds = array<i64: 2>, tpu.core_type = #tpu.core_type<sc_scalar_subcore>, window_params = []} {
    return
  }
}

module attributes {stable_mosaic.version = 11 : i64} {
  func.func private @main(%arg0: i32) attributes {dimension_semantics = [#tpu.dimension_semantics<core_parallel>], iteration_bounds = array<i64: 2>, tpu.core_type = #tpu.core_type<sc_scalar_subcore>, window_params = []} {
    return
  }
}

module attributes {stable_mosaic.version = 11 : i64} {
  func.func @_fused_rgcn_kernel(%arg0: i32, %arg1: i32, %arg2: memref<32x128xbf16, #tpu.memory_space<vmem>>, %arg3: memref<128x128xbf16, #tpu.memory_space<vmem>>, %arg4: memref<1x128xf32, #tpu.memory_space<vmem>>, %arg5: memref<32x128xf32, #tpu.memory_space<vmem>>, %arg6: memref<32x128xf32, #tpu.memory_space<vmem>>) attributes {dimension_semantics = [#tpu.dimension_semantics<parallel>, #tpu.dimension_semantics<arbitrary>], iteration_bounds = array<i64: 1, 1>, scalar_prefetch = 0 : i64, scratch_operands = 1 : i64, tpu.core_type = #tpu.core_type<tc>, window_params = [{transform_indices = @transform_0, window_bounds = array<i64: 32, 128>}, {transform_indices = @transform_1, window_bounds = array<i64: 128, 128>}, {pipeline_mode = #tpu.pipeline_mode<synchronous>, transform_indices = @transform_2, window_bounds = array<i64: 1, 128>}, {transform_indices = @transform_3, window_bounds = array<i64: 32, 128>}]} {
    %c0_i32 = arith.constant 0 : i32
    %0 = arith.cmpi eq, %arg1, %c0_i32 : i32
    %1 = arith.extui %0 : i1 to i32
    %c0_i32_0 = arith.constant 0 : i32
    %2 = arith.cmpi ne, %1, %c0_i32_0 : i32
    scf.if %2 {
      %cst_10 = arith.constant 0.000000e+00 : f32
      %12 = vector.broadcast %cst_10 : f32 to vector<32x128xf32>
      %c0_11 = arith.constant 0 : index
      %c0_12 = arith.constant 0 : index
      %13 = vector.load %arg6[%c0_11, %c0_12] : memref<32x128xf32, #tpu.memory_space<vmem>>, vector<32x128xf32>
      tpu.vector_store %arg6[%c0_11, %c0_12], %12 {strides = array<i32>} : memref<32x128xf32, #tpu.memory_space<vmem>>, vector<32x128xf32>,
    } else {
    }
    %c0 = arith.constant 0 : index
    %c0_1 = arith.constant 0 : index
    %3 = vector.load %arg6[%c0, %c0_1] : memref<32x128xf32, #tpu.memory_space<vmem>>, vector<32x128xf32>
    %c0_2 = arith.constant 0 : index
    %c0_3 = arith.constant 0 : index
    %4 = vector.load %arg2[%c0_2, %c0_3] : memref<32x128xbf16, #tpu.memory_space<vmem>>, vector<32x128xbf16>
    %c0_4 = arith.constant 0 : index
    %c0_5 = arith.constant 0 : index
    %5 = vector.load %arg3[%c0_4, %c0_5] : memref<128x128xbf16, #tpu.memory_space<vmem>>, vector<128x128xbf16>
    %cst = arith.constant dense<0.000000e+00> : vector<32x128xf32>
    %6 = tpu.matmul %4, %5, %cst {dimension_numbers = #tpu.dot_dimension_numbers<[1], [0], [0], [1], [0, 0, 1, 1], [], []>} : vector<32x128xbf16>, vector<128x128xbf16>, vector<32x128xf32> -> vector<32x128xf32>
    %7 = arith.addf %3, %6 : vector<32x128xf32>
    %c0_6 = arith.constant 0 : index
    %c0_7 = arith.constant 0 : index
    %8 = vector.load %arg6[%c0_6, %c0_7] : memref<32x128xf32, #tpu.memory_space<vmem>>, vector<32x128xf32>
    tpu.vector_store %arg6[%c0_6, %c0_7], %7 {strides = array<i32>} : memref<32x128xf32, #tpu.memory_space<vmem>>, vector<32x128xf32>,
    %c0_i32_8 = arith.constant 0 : i32
    %9 = arith.cmpi eq, %arg1, %c0_i32_8 : i32
    %10 = arith.extui %9 : i1 to i32
    %c0_i32_9 = arith.constant 0 : i32
    %11 = arith.cmpi ne, %10, %c0_i32_9 : i32
    scf.if %11 {
      %c0_10 = arith.constant 0 : index
      %c0_11 = arith.constant 0 : index
      %12 = vector.load %arg6[%c0_10, %c0_11] : memref<32x128xf32, #tpu.memory_space<vmem>>, vector<32x128xf32>
      %c0_12 = arith.constant 0 : index
      %c0_13 = arith.constant 0 : index
      %13 = vector.load %arg4[%c0_12, %c0_13] : memref<1x128xf32, #tpu.memory_space<vmem>>, vector<1x128xf32>
      %14 = vector.broadcast %13 : vector<1x128xf32> to vector<32x128xf32>
      %15 = arith.addf %12, %14 : vector<32x128xf32>
      %c0_14 = arith.constant 0 : index
      %c0_15 = arith.constant 0 : index
      %16 = vector.load %arg5[%c0_14, %c0_15] : memref<32x128xf32, #tpu.memory_space<vmem>>, vector<32x128xf32>
      tpu.vector_store %arg5[%c0_14, %c0_15], %15 {strides = array<i32>} : memref<32x128xf32, #tpu.memory_space<vmem>>, vector<32x128xf32>,
    } else {
    }
    return
  }
  func.func @transform_0(%arg0: i32, %arg1: i32) -> (i32, i32) {
    %c0_i32 = arith.constant 0 : i32
    return %arg0, %arg1 : i32, i32
  }
  func.func @transform_1(%arg0: i32, %arg1: i32) -> (i32, i32) {
    %c0_i32 = arith.constant 0 : i32
    %c0_i32_0 = arith.constant 0 : i32
    return %arg1, %c0_i32 : i32, i32
  }
  func.func @transform_2(%arg0: i32, %arg1: i32) -> (i32, i32) {
    %c0_i32 = arith.constant 0 : i32
    %c0_i32_0 = arith.constant 0 : i32
    %c0_i32_1 = arith.constant 0 : i32
    return %c0_i32, %c0_i32_0 : i32, i32
  }
  func.func @transform_3(%arg0: i32, %arg1: i32) -> (i32, i32) {
    %c0_i32 = arith.constant 0 : i32
    %c0_i32_0 = arith.constant 0 : i32
    return %arg0, %c0_i32 : i32, i32
  }
}

</mosaic_0001>

<bundles_post_ra>
// kernel: dtrr_forward.1
= control target key start
LH: loop header
LB: loop body
LE: loop exit
PB: predicated region body
PF: predicated region fallthrough
CT: control target
= control target key end

     0   :  { %s306_s1 = inlined_call_operand.vmem [shape: bf16[128,128], index: 1, kind: input, shape index: {}]   ;;  %s307_s0 = inlined_call_operand.vmem [shape: bf16[32,128], index: 0, kind: input, shape index: {}]   ;;  %s308_s2 = inlined_call_operand.vmem [shape: f32[1,128], index: 2, kind: input, shape index: {}]   ;;  %s309_s3 = inlined_call_operand.vmem [shape: f32[32,128], index: 3, kind: output, shape index: {}]  }
   0x1   :  { %v231_v0 = vld [vmem:[%s306_s1] sm:$0xff]   ;;  %v232_v1 = vld [vmem:[%s306_s1 + $0x8] sm:$0xff]   ;;  %v233_v2 = vld [vmem:[%s306_s1 + $0x10] sm:$0xff]  }
   0x2   :  { %211 = vmatprep.subr.bf16.mxu0 %v231_v0  ;;  %v234_v3 = vld [vmem:[%s306_s1 + $0x18] sm:$0xff]   ;;  %v239_v4 = vld [vmem:[%s307_s0] sm:$0xff]   ;;  %v236_v6 = vld [vmem:[%s306_s1 + $0x28] sm:$0xff]  }
   0x3   :  { %212 = vmatpush3.bf16.msra.mxu0 %v231_v0  ;;  %227 = vmatprep.mubr.bf16.mxu0 %v239_v4  ;;  %v235_v5 = vld [vmem:[%s306_s1 + $0x20] sm:$0xff]   ;;  %v237_v7 = vld [vmem:[%s306_s1 + $0x30] sm:$0xff]   ;;  %v238_v8 = vld [vmem:[%s306_s1 + $0x38] sm:$0xff]  }
   0x4   :  { %213 = vmatprep.subr.bf16.mxu0 %v232_v1  ;;  %v240_v9 = vld [vmem:[%s307_s0 + $0x8] sm:$0xff]   ;;  %v200_v10 = vld [vmem:[%s308_s2] ss:$0 sm:$0xff] }
   0x7   :  { %214 = vmatpush3.bf16.msra.mxu0 %v232_v1 }
   0x8   :  { %215 = vmatprep.subr.bf16.mxu0 %v233_v2 }
   0xb   :  { %216 = vmatpush3.bf16.msra.mxu0 %v233_v2 }
   0xc   :  { %217 = vmatprep.subr.bf16.mxu0 %v234_v3 }
   0xf   :  { %218 = vmatpush3.bf16.msra.mxu0 %v234_v3 }
  0x10   :  { %219 = vmatprep.subr.bf16.mxu0 %v235_v5 }
  0x13   :  { %220 = vmatpush3.bf16.msra.mxu0 %v235_v5 }
  0x14   :  { %221 = vmatprep.subr.bf16.mxu0 %v236_v6 }
  0x17   :  { %222 = vmatpush3.bf16.msra.mxu0 %v236_v6 }
  0x18   :  { %223 = vmatprep.subr.bf16.mxu0 %v237_v7 }
  0x1b   :  { %224 = vmatpush3.bf16.msra.mxu0 %v237_v7 }
  0x1c   :  { %225 = vmatprep.subr.bf16.mxu0 %v238_v8 }
  0x1f   :  { %226 = vmatpush3.bf16.msra.mxu0 %v238_v8 }
  0x22   :  { %228 = vmatmul.mubr.bf16.vlgmr.msra.gmra.mrb[0].mxu0 %v240_v9 }
  0xf5   :  { %v229_v11 = vpop.f32.mrb[0].mxu0 }
  0xf6   :  { %v180_v12 = vadd.f32 %v229_v11, %v200_v10  ;;  %v141_v13 = vpop.f32.mrb[1].mxu0 }
  0xf7   :  { %v178_v14 = vadd.f32 %v200_v10, %v141_v13  ;;  %v230_v15 = vpop.f32.mrb[2].mxu0 }
  0xf8   :  { %184 = vst [vmem:[%s309_s3 + $0x10] sm:$0xff] %v180_v12  ;;  %v181_v16 = vadd.f32 %v230_v15, %v200_v10  ;;  %v144_v17 = vpop.f32.mrb[3].mxu0 }
  0xf9   :  { %182 = vst [vmem:[%s309_s3] sm:$0xff] %v178_v14  ;;  %v179_v18 = vadd.f32 %v200_v10, %v144_v17 }
  0xfa   :  { %185 = vst [vmem:[%s309_s3 + $0x18] sm:$0xff] %v181_v16 }
  0xfb   :  { %183 = vst [vmem:[%s309_s3 + $0x8] sm:$0xff] %v179_v18 }

</bundles_post_ra>
